<compile_context>
chip_gen: v7x
topology: tpu7x:2x2x1
jax: 0.10.0
libtpu: 0.0.40
codegen_flags: <defaults>
</compile_context>

<pallas_src>
import functools

import jax
import jax.numpy as jnp
from jax import lax
from jax.experimental import pallas as pl
from jax.experimental.pallas import tpu as pltpu


VMEM_LIMIT_BYTES = 48 * 1024 * 1024   # safe on v7x (64 MiB); plenty for v5e/v6e


# ------------------- projection kernel: grid-invariant work -------------------

def gat_project_kernel(h_ref, w_ref, a_srcT_ref, a_dstB_ref,
                       z_ref, s_srcT_ref, s_dst_ref):
    f32 = jnp.float32
    bf16 = jnp.bfloat16

    h = h_ref[...].astype(bf16)                       # (N, in_dim)  bf16 MXU operand
    w = w_ref[...].astype(bf16)                       # (in_dim, H*D)
    z = jnp.dot(h, w, preferred_element_type=f32)     # (N, H*D) f32

    z_ref[...] = z.astype(z_ref.dtype)                # bf16: aggregation operand

    # s_srcT[hd, src] = z[src, hd*D:(hd+1)*D] . a_src[hd]  (scores along lanes)
    s_srcT_ref[...] = lax.dot_general(
        a_srcT_ref[...], z, (((1,), (1,)), ((), ())),
        preferred_element_type=f32).astype(s_srcT_ref.dtype)         # (H, N)
    # s_dst[dst, hd]  = z[dst, hd*D:(hd+1)*D] . a_dst[hd]
    s_dst_ref[...] = jnp.dot(z, a_dstB_ref[...],
                             preferred_element_type=f32).astype(s_dst_ref.dtype)


# -------------------- attention kernel: per destination tile -------------------

def gat_attention_kernel(s_srcT_ref, s_dst_ref, z_ref, adj_ref, out_ref, *,
                         num_heads, head_dim, negative_slope=0.01,
                         apply_elu=False, softmax_dtype=jnp.bfloat16):
    f32 = jnp.float32
    bf16 = jnp.bfloat16
    dt = softmax_dtype                                 # bf16 on v6e/v7x, f32 on v5e

    adj = adj_ref[...]                                 # (TM, N) bf16 edge weights
    edge = adj != 0                                    # existence mask from weights
    z = z_ref[...]                                     # (N, H*D) bf16
    n_src = z.shape[0]
    ones_col = jnp.ones((n_src, 1), bf16)              # folds row-sum into the MXU
    s_dst = s_dst_ref[...]                             # (TM, H) f32
    s_srcT = s_srcT_ref[...]                           # (H, N)  f32
    neg = jnp.asarray(-1e30, dt)                       # finite fill: no-NaN for empty rows
    adj_dt = adj.astype(dt)

    head_outs = []
    for hd in range(num_heads):                        # H is small & static -> unrolled
        # Per-head (TM, N) temporaries are dead before the next head iteration.
        s_d = s_dst[:, hd:hd + 1].astype(dt)           # (TM, 1)
        s_s = s_srcT[hd:hd + 1, :].astype(dt)          # (1, N)
        logits = s_d + s_s                              # (TM, N) broadcast add (VPU)
        leaky = jnp.maximum(logits, negative_slope * logits)
        e = jnp.where(edge, leaky * adj_dt, neg)        # weighted + masked logits
        m = jnp.max(e, axis=1, keepdims=True)
        p = jnp.exp(e - m)                              # unnormalized alpha (EUP)
        p_mm = p.astype(bf16)                           # bf16 MXU operand

        z_h = z[:, hd * head_dim:(hd + 1) * head_dim]   # (N, D)
        acc = jnp.dot(p_mm, z_h, preferred_element_type=f32)       # (TM, D)
        l = jnp.dot(p_mm, ones_col, preferred_element_type=f32)    # (TM, 1) row sums (MXU)
        out_h = acc * pl.reciprocal(l, approx=True)
        if apply_elu:                                   # fused F.elu (layer 1 only)
            out_h = jnp.where(out_h > 0, out_h, jnp.exp(out_h) - 1.0)
        head_outs.append(out_h)

    # Single wide store in the torch.cat(head_outs, dim=1) layout.
    out_tile = head_outs[0] if num_heads == 1 else jnp.concatenate(head_outs, axis=-1)
    out_ref[...] = out_tile.astype(out_ref.dtype)


# ----------------------------------- wrapper -----------------------------------

def _pick_block_rows(N, vmem_budget_bytes=40 * 1024 * 1024):
    # adj tile (bf16, double buffered) + ~4 live (tm, N) bf16 softmax temps.
    per_row = max(1, N * 2 * (2 + 4))
    cap = max(8, vmem_budget_bytes // per_row)
    for cand in (1024, 512, 256, 128, 64, 32, 16, 8):
        if cand <= cap and N % cand == 0:
            return cand
    return N


def multi_head_gat_layer(h, w_all, a_srcT, a_dstB, adj_bf16, *, num_heads, head_dim,
                         block_rows=None, apply_elu=False, out_dtype=jnp.float32,
                         softmax_dtype=jnp.bfloat16):
    """One MultiHeadGATLayer (merge='cat').  Returns (N, num_heads*head_dim)."""
    N, in_dim = h.shape
    HD = num_heads * head_dim
    assert w_all.shape == (in_dim, HD)
    assert adj_bf16.shape == (N, N)

    # --- grid-invariant projection + attention scores, computed once ---
    z_bf16, s_srcT, s_dst = pl.pallas_call(
        gat_project_kernel,
        out_shape=(jax.ShapeDtypeStruct((N, HD), jnp.bfloat16),
                   jax.ShapeDtypeStruct((num_heads, N), jnp.float32),
                   jax.ShapeDtypeStruct((N, num_heads), jnp.float32)),
        grid_spec=pltpu.PrefetchScalarGridSpec(
            num_scalar_prefetch=0,
            grid=(1,),
            in_specs=[
                pl.BlockSpec((N, in_dim), lambda i: (0, 0)),
                pl.BlockSpec((in_dim, HD), lambda i: (0, 0)),
                pl.BlockSpec((num_heads, HD), lambda i: (0, 0)),
                pl.BlockSpec((HD, num_heads), lambda i: (0, 0)),
            ],
            out_specs=[
                pl.BlockSpec((N, HD), lambda i: (0, 0)),
                pl.BlockSpec((num_heads, N), lambda i: (0, 0)),
                pl.BlockSpec((N, num_heads), lambda i: (0, 0)),
            ],
        ),
        compiler_params=pltpu.CompilerParams(vmem_limit_bytes=VMEM_LIMIT_BYTES),
    )(h, w_all, a_srcT, a_dstB)

    # --- attention / aggregation over destination row tiles ---
    if block_rows is None:
        block_rows = _pick_block_rows(N)
    tm = block_rows
    assert N % tm == 0 and (tm % 8 == 0 or tm == N)

    kernel = functools.partial(gat_attention_kernel, num_heads=num_heads,
                               head_dim=head_dim, apply_elu=apply_elu,
                               softmax_dtype=softmax_dtype)

    return pl.pallas_call(
        kernel,
        out_shape=jax.ShapeDtypeStruct((N, HD), out_dtype),
        grid_spec=pltpu.PrefetchScalarGridSpec(
            num_scalar_prefetch=0,
            grid=(N // tm,),
            in_specs=[
                pl.BlockSpec((num_heads, N), lambda i: (0, 0)),   # s_srcT  (constant)
                pl.BlockSpec((tm, num_heads), lambda i: (i, 0)),  # s_dst   (tile)
                pl.BlockSpec((N, HD), lambda i: (0, 0)),          # z bf16  (constant)
                pl.BlockSpec((tm, N), lambda i: (i, 0)),          # adj bf16 row tile
            ],
            out_specs=pl.BlockSpec((tm, HD), lambda i: (i, 0)),   # cat layout
        ),
        compiler_params=pltpu.CompilerParams(
            dimension_semantics=("parallel",),
            vmem_limit_bytes=VMEM_LIMIT_BYTES,
        ),
    )(s_srcT, s_dst, z_bf16, adj_bf16)


def pack_layer_params(W, A):
    """W: (H, D, in_dim) per-head nn.Linear weights; A: (H, 2*D) attn_fc weights.
    Returns kernel-ready (w_all, a_srcT_blockdiag, a_dstB_blockdiag)."""
    H, D, in_dim = W.shape
    w_all = jnp.transpose(W, (2, 0, 1)).reshape(in_dim, H * D)          # (in_dim, H*D)
    a_src, a_dst = A[:, :D], A[:, D:]                                   # (H, D) each
    eye = jnp.eye(H, dtype=A.dtype)
    # a_srcT[h, g*D+d] = [h==g] * a_src[h, d]
    a_srcT = (eye[:, :, None] * a_src[:, None, :]).reshape(H, H * D)
    # a_dstB[g*D+d, h] = [g==h] * a_dst[h, d]
    a_dstB = (eye[:, None, :] * jnp.swapaxes(a_dst, 0, 1)[None, :, :]).reshape(H * D, H)
    return w_all, a_srcT, a_dstB


def gat_forward(h, params1, params2, adj, block_rows=None,
                softmax_dtype=jnp.bfloat16):
    """GAT.forward: layer1 (multi-head, cat) -> F.elu (fused) -> layer2 (1 head).
    softmax_dtype=jnp.float32 is the recommended setting on v5e (no bf16 VPU/EUP)."""
    w1, a1_srcT, a1_dstB = params1
    w2, a2_srcT, a2_dstB = params2
    h1_heads = a1_srcT.shape[0]
    h1_dim = w1.shape[1] // h1_heads
    h2_heads = a2_srcT.shape[0]
    h2_dim = w2.shape[1] // h2_heads

    adj_bf16 = adj.astype(jnp.bfloat16)   # dominant HBM/VMEM stream at half width

    h1 = multi_head_gat_layer(h, w1, a1_srcT, a1_dstB, adj_bf16,
                              num_heads=h1_heads, head_dim=h1_dim,
                              block_rows=block_rows, apply_elu=True,
                              out_dtype=jnp.bfloat16, softmax_dtype=softmax_dtype)
    return multi_head_gat_layer(h1, w2, a2_srcT, a2_dstB, adj_bf16,
                                num_heads=h2_heads, head_dim=h2_dim,
                                block_rows=block_rows, apply_elu=False,
                                out_dtype=jnp.float32, softmax_dtype=softmax_dtype)


# ----------------------------- pure-JAX reference -----------------------------

def gat_layer_ref(h, W, A, adj):
    H, D, _ = W.shape
    a_src, a_dst = A[:, :D], A[:, D:]
    edge = adj != 0.0
    outs = []
    for i in range(H):
        z = h @ W[i].T
        s_src = z @ a_src[i]
        s_dst = z @ a_dst[i]
        logits = s_src[None, :] + s_dst[:, None]
        leaky = jnp.where(logits > 0, logits, 0.01 * logits)
        e = jnp.where(edge, leaky * adj, -jnp.inf)
        p = jnp.exp(e - jnp.max(e, axis=1, keepdims=True))
        alpha = p / jnp.sum(p, axis=1, keepdims=True)
        outs.append(alpha @ z)
    return jnp.concatenate(outs, axis=1)


def gat_forward_ref(h, W1, A1, W2, A2, adj):
    h1 = gat_layer_ref(h, W1, A1, adj)
    h1 = jnp.where(h1 > 0, h1, jnp.exp(h1) - 1.0)        # F.elu
    return gat_layer_ref(h1, W2, A2, adj)


if __name__ == "__main__":
    N = 128
    in_dim, hidden_dim, out_dim, num_heads = 16, 8, 8, 4

    key = jax.random.PRNGKey(0)
    k_h, k_w1, k_a1, k_w2, k_a2, k_adj, k_m = jax.random.split(key, 7)

    h = jax.random.normal(k_h, (N, in_dim), jnp.float32)

    gain = jnp.sqrt(2.0)  # nn.init.calculate_gain('relu')

    # Layer 1: num_heads heads, in_dim -> hidden_dim each (merge='cat').
    fc1_std = gain * jnp.sqrt(2.0 / (in_dim + hidden_dim))
    W1 = fc1_std * jax.random.normal(k_w1, (num_heads, hidden_dim, in_dim), jnp.float32)
    a1_std = gain * jnp.sqrt(2.0 / (2 * hidden_dim + 1))
    A1 = a1_std * jax.random.normal(k_a1, (num_heads, 2 * hidden_dim), jnp.float32)

    # Layer 2: 1 head, (num_heads*hidden_dim) -> out_dim.
    in_dim2 = num_heads * hidden_dim
    fc2_std = gain * jnp.sqrt(2.0 / (in_dim2 + out_dim))
    W2 = fc2_std * jax.random.normal(k_w2, (1, out_dim, in_dim2), jnp.float32)
    a2_std = gain * jnp.sqrt(2.0 / (2 * out_dim + 1))
    A2 = a2_std * jax.random.normal(k_a2, (1, 2 * out_dim), jnp.float32)

    # Dense graph: random edges + self-loops so every node has >= 1 in-edge.
    # adj is nonzero exactly on edges (weights in [0.5, 1.5]).
    rand = jax.random.uniform(k_m, (N, N))
    mask = (rand < 0.3).astype(jnp.float32)
    mask = jnp.maximum(mask, jnp.eye(N, dtype=jnp.float32))
    weights = 0.5 + jax.random.uniform(k_adj, (N, N))
    adj = weights * mask

    params1 = pack_layer_params(W1, A1)
    params2 = pack_layer_params(W2, A2)

    # block_rows=64 exercises multi-tile row pipelining even at this small N.
    out = gat_forward(h, params1, params2, adj, block_rows=64)
    out = jax.block_until_ready(out)

    ref = gat_forward_ref(h, W1, A1, W2, A2, adj)

    assert out.shape == (N, out_dim)
    assert bool(jnp.all(jnp.isfinite(out)))
    # bf16 adjacency / projection / softmax pipeline / inter-layer activations
    # + approx reciprocal -> relaxed tolerance vs the f32 reference.
    err = float(jnp.max(jnp.abs(out - ref)) / (jnp.max(jnp.abs(ref)) + 1e-6))
    assert err < 1e-1, f"max normalized error {err}"
    print("KERNEL_OK")
</pallas_src>

<mosaic_0001>
module attributes {stable_mosaic.version = 11 : i64} {
  func.func @gat_project_kernel(%arg0: i32, %arg1: memref<128x16xf32, #tpu.memory_space<vmem>>, %arg2: memref<16x32xf32, #tpu.memory_space<vmem>>, %arg3: memref<4x32xf32, #tpu.memory_space<vmem>>, %arg4: memref<32x4xf32, #tpu.memory_space<vmem>>, %arg5: memref<128x32xbf16, #tpu.memory_space<vmem>>, %arg6: memref<4x128xf32, #tpu.memory_space<vmem>>, %arg7: memref<128x4xf32, #tpu.memory_space<vmem>>) attributes {dimension_semantics = [#tpu.dimension_semantics<arbitrary>], iteration_bounds = array<i64: 1>, scalar_prefetch = 0 : i64, scratch_operands = 0 : i64, tpu.core_type = #tpu.core_type<tc>, window_params = [{pipeline_mode = #tpu.pipeline_mode<synchronous>, transform_indices = @transform_0, window_bounds = array<i64: 128, 16>}, {pipeline_mode = #tpu.pipeline_mode<synchronous>, transform_indices = @transform_1, window_bounds = array<i64: 16, 32>}, {pipeline_mode = #tpu.pipeline_mode<synchronous>, transform_indices = @transform_2, window_bounds = array<i64: 4, 32>}, {pipeline_mode = #tpu.pipeline_mode<synchronous>, transform_indices = @transform_3, window_bounds = array<i64: 32, 4>}, {pipeline_mode = #tpu.pipeline_mode<synchronous>, transform_indices = @transform_4, window_bounds = array<i64: 128, 32>}, {pipeline_mode = #tpu.pipeline_mode<synchronous>, transform_indices = @transform_5, window_bounds = array<i64: 4, 128>}, {pipeline_mode = #tpu.pipeline_mode<synchronous>, transform_indices = @transform_6, window_bounds = array<i64: 128, 4>}]} {
    %c0 = arith.constant 0 : index
    %c0_0 = arith.constant 0 : index
    %0 = vector.load %arg1[%c0, %c0_0] : memref<128x16xf32, #tpu.memory_space<vmem>>, vector<128x16xf32>
    %1 = arith.truncf %0 : vector<128x16xf32> to vector<128x16xbf16>
    %c0_1 = arith.constant 0 : index
    %c0_2 = arith.constant 0 : index
    %2 = vector.load %arg2[%c0_1, %c0_2] : memref<16x32xf32, #tpu.memory_space<vmem>>, vector<16x32xf32>
    %3 = arith.truncf %2 : vector<16x32xf32> to vector<16x32xbf16>
    %cst = arith.constant dense<0.000000e+00> : vector<128x32xf32>
    %4 = tpu.matmul %1, %3, %cst {dimension_numbers = #tpu.dot_dimension_numbers<[1], [0], [0], [1], [0, 0, 1, 1], [], []>} : vector<128x16xbf16>, vector<16x32xbf16>, vector<128x32xf32> -> vector<128x32xf32>
    %5 = arith.truncf %4 : vector<128x32xf32> to vector<128x32xbf16>
    %c0_3 = arith.constant 0 : index
    %c0_4 = arith.constant 0 : index
    %6 = vector.load %arg5[%c0_3, %c0_4] : memref<128x32xbf16, #tpu.memory_space<vmem>>, vector<128x32xbf16>
    tpu.vector_store %arg5[%c0_3, %c0_4], %5 {strides = array<i32>} : memref<128x32xbf16, #tpu.memory_space<vmem>>, vector<128x32xbf16>,
    %c0_5 = arith.constant 0 : index
    %c0_6 = arith.constant 0 : index
    %7 = vector.load %arg3[%c0_5, %c0_6] : memref<4x32xf32, #tpu.memory_space<vmem>>, vector<4x32xf32>
    %cst_7 = arith.constant dense<0.000000e+00> : vector<4x128xf32>
    %8 = tpu.matmul %7, %4, %cst_7 {dimension_numbers = #tpu.dot_dimension_numbers<[1], [1], [0], [0], [0, 0, 1, 0], [], []>} : vector<4x32xf32>, vector<128x32xf32>, vector<4x128xf32> -> vector<4x128xf32>
    %c0_8 = arith.constant 0 : index
    %c0_9 = arith.constant 0 : index
    %9 = vector.load %arg6[%c0_8, %c0_9] : memref<4x128xf32, #tpu.memory_space<vmem>>, vector<4x128xf32>
    tpu.vector_store %arg6[%c0_8, %c0_9], %8 {strides = array<i32>} : memref<4x128xf32, #tpu.memory_space<vmem>>, vector<4x128xf32>,
    %c0_10 = arith.constant 0 : index
    %c0_11 = arith.constant 0 : index
    %10 = vector.load %arg4[%c0_10, %c0_11] : memref<32x4xf32, #tpu.memory_space<vmem>>, vector<32x4xf32>
    %cst_12 = arith.constant dense<0.000000e+00> : vector<128x4xf32>
    %11 = tpu.matmul %4, %10, %cst_12 {dimension_numbers = #tpu.dot_dimension_numbers<[1], [0], [0], [1], [0, 0, 1, 1], [], []>} : vector<128x32xf32>, vector<32x4xf32>, vector<128x4xf32> -> vector<128x4xf32>
    %c0_13 = arith.constant 0 : index
    %c0_14 = arith.constant 0 : index
    %12 = vector.load %arg7[%c0_13, %c0_14] : memref<128x4xf32, #tpu.memory_space<vmem>>, vector<128x4xf32>
    tpu.vector_store %arg7[%c0_13, %c0_14], %11 {strides = array<i32>} : memref<128x4xf32, #tpu.memory_space<vmem>>, vector<128x4xf32>,
    return
  }
  func.func @transform_0(%arg0: i32) -> (i32, i32) {
    %c0_i32 = arith.constant 0 : i32
    %c0_i32_0 = arith.constant 0 : i32
    %c0_i32_1 = arith.constant 0 : i32
    return %c0_i32, %c0_i32_0 : i32, i32
  }
  func.func @transform_1(%arg0: i32) -> (i32, i32) {
    %c0_i32 = arith.constant 0 : i32
    %c0_i32_0 = arith.constant 0 : i32
    %c0_i32_1 = arith.constant 0 : i32
    return %c0_i32, %c0_i32_0 : i32, i32
  }
  func.func @transform_2(%arg0: i32) -> (i32, i32) {
    %c0_i32 = arith.constant 0 : i32
    %c0_i32_0 = arith.constant 0 : i32
    %c0_i32_1 = arith.constant 0 : i32
    return %c0_i32, %c0_i32_0 : i32, i32
  }
  func.func @transform_3(%arg0: i32) -> (i32, i32) {
    %c0_i32 = arith.constant 0 : i32
    %c0_i32_0 = arith.constant 0 : i32
    %c0_i32_1 = arith.constant 0 : i32
    return %c0_i32, %c0_i32_0 : i32, i32
  }
  func.func @transform_4(%arg0: i32) -> (i32, i32) {
    %c0_i32 = arith.constant 0 : i32
    %c0_i32_0 = arith.constant 0 : i32
    %c0_i32_1 = arith.constant 0 : i32
    return %c0_i32, %c0_i32_0 : i32, i32
  }
  func.func @transform_5(%arg0: i32) -> (i32, i32) {
    %c0_i32 = arith.constant 0 : i32
    %c0_i32_0 = arith.constant 0 : i32
    %c0_i32_1 = arith.constant 0 : i32
    return %c0_i32, %c0_i32_0 : i32, i32
  }
  func.func @transform_6(%arg0: i32) -> (i32, i32) {
    %c0_i32 = arith.constant 0 : i32
    %c0_i32_0 = arith.constant 0 : i32
    %c0_i32_1 = arith.constant 0 : i32
    return %c0_i32, %c0_i32_0 : i32, i32
  }
}

</mosaic_0001>

<bundles_post_ra>
// kernel: tpu_custom_call.1
= control target key start
LH: loop header
LB: loop body
LE: loop exit
PB: predicated region body
PF: predicated region fallthrough
CT: control target
= control target key end

     0   :  { %vm49_vm0 = vcmask 130048   ;;  %s1139_s0 = inlined_call_operand.vmem [shape: f32[128,16], index: 0, kind: input, shape index: {}]   ;;  %s1140_s1 = inlined_call_operand.vmem [shape: f32[16,32], index: 1, kind: input, shape index: {}]   ;;  %s1141_s2 = inlined_call_operand.vmem [shape: f32[4,32], index: 2, kind: input, shape index: {}]   ;;  %s1142_s3 = inlined_call_operand.vmem [shape: f32[32,4], index: 3, kind: input, shape index: {}]   ;;  %s1143_s4 = inlined_call_operand.vmem [shape: bf16[128,32], index: 4, kind: output, shape index: {0}]   ;;  %s1144_s5 = inlined_call_operand.hbm [shape: f32[4,128], index: 5, kind: output, shape index: {1}]   ;;  %s1145_s6 = inlined_call_operand.vmem [shape: f32[128,4], index: 6, kind: output, shape index: {2}]  }
   0x1   :  { %v46_v0 = vld [vmem:[%s1140_s1] sm:$0xff]  ;;  %v47_v1 = vld [vmem:[%s1140_s1 + $0x8] sm:$0xff]  ;;  %v24_v5 = vld [vmem:[%s1139_s0 + $0x10] sm:$0xff] }
   0x2   :  { %v22_v2 = vld [vmem:[%s1139_s0] sm:$0xff]  ;;  %v48_v3 = vpack.c.bf16 %v47_v1, %v46_v0  ;;  %v23_v4 = vld [vmem:[%s1139_s0 + $0x8] sm:$0xff]  ;;  %v25_v6 = vld [vmem:[%s1139_s0 + $0x18] sm:$0xff] }
   0x3   :  { %v38_v7 = vpack.c.bf16 %v23_v4, %v22_v2  ;;  %v26_v8 = vld [vmem:[%s1139_s0 + $0x20] sm:$0xff]  ;;  %v27_v9 = vld [vmem:[%s1139_s0 + $0x28] sm:$0xff]  ;;  %v39_v10 = vpack.c.bf16 %v25_v6, %v24_v5 }
   0x4   :  { %683 = vmatprep.subr.bf16.mxu0 %v48_v3  ;;  %v40_v11 = vpack.c.bf16 %v27_v9, %v26_v8  ;;  %v376_v12 = vld [vmem:[%s1142_s3] sm:$0xff]  ;;  %v377_v13 = vld [vmem:[%s1142_s3 + $0x8] sm:$0xff] }
   0x5   :  { %684 = vmatpush3.bf16.msra.mxu0 %v48_v3  ;;  %685 = vmatprep.mubr.msk.bf16.mxu0 %vm49_vm0, %v38_v7 }
   0x6   :  { %12 = vsyncpa [#allocation3], 0  ;;  %v800_v14 = vpack.c.bf16 %v377_v13, %v376_v12  ;;  %v28_v15 = vld [vmem:[%s1139_s0 + $0x30] sm:$0xff]  ;;  %v29_v16 = vld [vmem:[%s1139_s0 + $0x38] sm:$0xff]  ;;  %v836_v33 = vmov 0.0|0.0   ;;  %vm837_vm1 = vmmov 0  }
   0x7   :  { %v30_v17 = vld [vmem:[%s1139_s0 + $0x40] sm:$0xff]  ;;  %v31_v18 = vld [vmem:[%s1139_s0 + $0x48] sm:$0xff]  ;;  %v41_v19 = vpack.c.bf16 %v29_v16, %v28_v15  ;;  %v32_v21 = vld [vmem:[%s1139_s0 + $0x50] sm:$0xff]  ;;  %768 = vmatprep.subr.bf16.mxu1 %v836_v33  ;;  %v838_v34 = vmov 0.0   ;;  %vm253_vm2 = vcmask 261120   ;;  %vm235_vm3 = vcmask 257024  }
   0x8   :  { %686 = vmatmul.mubr.msk.bf16.vlgmr.msra.gmra.mrb[0].mxu0 %vm49_vm0, %v39_v10  ;;  %801 = vmatprep.subr.bf16.mxu0 %v800_v14  ;;  %v42_v20 = vpack.c.bf16 %v31_v18, %v30_v17  ;;  %v33_v22 = vld [vmem:[%s1139_s0 + $0x58] sm:$0xff]  ;;  %v34_v23 = vld [vmem:[%s1139_s0 + $0x60] sm:$0xff]  ;;  %v35_v24 = vld [vmem:[%s1139_s0 + $0x68] sm:$0xff]  ;;  %vm525_vm5 = vcmask 31744   ;;  %s839_s22 = smov [#allocation2]  }
   0x9   :  { %689 = vmatprep.mubr.msk.bf16.mxu0 %vm49_vm0, %v40_v11  ;;  %803 = vmatpush3.bf16.msra.mxu0 %v800_v14  ;;  %v43_v25 = vpack.c.bf16 %v33_v22, %v32_v21  ;;  %v44_v26 = vpack.c.bf16 %v35_v24, %v34_v23  ;;  %v36_v27 = vld [vmem:[%s1139_s0 + $0x70] sm:$0xff]  ;;  %v37_v28 = vld [vmem:[%s1139_s0 + $0x78] sm:$0xff]  ;;  %vm957_vm4 = vmpackc.low %vm253_vm2, %vm253_vm2  ;;  %s550_s23 = sshll.u32 %s839_s22, 4  ;;  %s551_s23 = int_to_ptr.vmem [resolvable:$true] %s550_s23 }
   0xa   :  { %v45_v29 = vpack.c.bf16 %v37_v28, %v36_v27  ;;  %v378_v30 = vld [vmem:[%s1142_s3 + $0x10] sm:$0xff]  ;;  %v379_v31 = vld [vmem:[%s1142_s3 + $0x18] sm:$0xff]  ;;  %733 = vmatprep.mubr.msk.f32.mxu1 %vm837_vm1, %v838_v34  ;;  %v252_v12 = vld [vmem:[%s1141_s2] sm:$0xf]  ;;  %s812_s24 = scalar_lea.vmem %s551_s23, 64  ;;  %p817_p1 = scmp.lt.s32.totalorder %s551_s23, %s551_s23 }
   0xb   :  { %v804_v32 = vpack.c.bf16 %v379_v31, %v378_v30  ;;  %p813_p0 = scmp.ne.s32.totalorder %s551_s23, %s812_s24  ;;  %p818_p2 = scmp.lt.s32.totalorder %s812_s24, %s812_s24 }
   0xd   :  { %805 = vmatprep.subr.bf16.mxu0 %v804_v32  ;;  %p819_p3 = por %p818_p2, %p817_p1 }
   0xe   :  { %807 = vmatpush3.bf16.msra.mxu0 %v804_v32 }
   0xf   :  { %p820_p4 = pnand %p819_p3, %p813_p0 }
  0x10   :  { %690 = vmatmul.mubr.msk.bf16.gmra.mrb[4].mxu0 %vm49_vm0, %v41_v19 }
  0x11   :  { %693 = vmatprep.mubr.msk.bf16.mxu0 %vm49_vm0, %v42_v20 }
  0x18   :  { %694 = vmatmul.mubr.msk.bf16.gmra.mrb[8].mxu0 %vm49_vm0, %v43_v25 }
  0x19   :  { %697 = vmatprep.mubr.msk.bf16.mxu0 %vm49_vm0, %v44_v26 }
  0x20   :  { %698 = vmatmul.mubr.msk.bf16.gmra.mrb[12].mxu0 %vm49_vm0, %v45_v29 }
  0xdb   :  { %v687_v35 = vpop.f32.mrb[0].mxu0 }
  0xdc   :  { %v623_v36 = vpack.c.bf16 %v687_v35, %v687_v35  ;;  %v108_v37 = vpop.f32.mrb[1].mxu0 }
  0xdd   :  { %v621_v38 = vpack.c.bf16 %v108_v37, %v108_v37  ;;  %v688_v39 = vpop.f32.mrb[2].mxu0  ;;  %744 = vmatprep.mubr.msk.f32.mxu0 %vm253_vm2, %v108_v37 }
  0xde   :  { %238 = vst.msk [vmem:[%s1143_s4 + $0x8] sm:$0xf] %vm235_vm3, %v623_v36  ;;  %v624_v40 = vpack.c.bf16 %v688_v39, %v688_v39  ;;  %v773_v41 = vpack.c.bf16 %v688_v39, %v687_v35  ;;  %v111_v42 = vpop.f32.mrb[3].mxu0 }
  0xdf   :  { %236 = vst.msk [vmem:[%s1143_s4] sm:$0xf] %vm235_vm3, %v621_v38  ;;  %v622_v44 = vpack.c.bf16 %v111_v42, %v111_v42  ;;  %v769_v45 = vpack.c.bf16 %v111_v42, %v108_v37  ;;  %745 = vmatmul.mubr.msk.f32.vlgmr.msra.gmra.mrb[16].mxu0 %vm253_vm2, %v111_v42 }
  0xe0   :  { %239 = vst.msk [vmem:[%s1143_s4 + $0xc] sm:$0xf] %vm235_vm3, %v624_v40  ;;  %747 = vmatprep.mubr.msk.f32.mxu0 %vm253_vm2, %v687_v35 }
  0xe1   :  { %237 = vst.msk [vmem:[%s1143_s4 + $0x4] sm:$0xf] %vm235_vm3, %v622_v44  ;;  %771 = vmatpush3.bf16.xpose.msk.msra.mxu1 %vm957_vm4, %v769_v45 }
  0xe2   :  { %772 = vmatprep.subr.bf16.mxu1 %v836_v33 }
  0xe3   :  { %v691_v46 = vpop.f32.mrb[4].mxu0  ;;  %748 = vmatmul.mubr.msk.f32.gmra.mrb[18].mxu0 %vm253_vm2, %v688_v39 }
  0xe4   :  { %v627_v47 = vpack.c.bf16 %v691_v46, %v691_v46  ;;  %v124_v48 = vpop.f32.mrb[5].mxu0 }
  0xe5   :  { %v625_v49 = vpack.c.bf16 %v124_v48, %v124_v48  ;;  %v692_v50 = vpop.f32.mrb[6].mxu0  ;;  %750 = vmatprep.mubr.msk.f32.mxu0 %vm253_vm2, %v124_v48 }
  0xe6   :  { %242 = vst.msk [vmem:[%s1143_s4 + $0x18] sm:$0xf] %vm235_vm3, %v627_v47  ;;  %v628_v51 = vpack.c.bf16 %v692_v50, %v692_v50  ;;  %v781_v52 = vpack.c.bf16 %v692_v50, %v691_v46  ;;  %v127_v53 = vpop.f32.mrb[7].mxu0 }
  0xe7   :  { %240 = vst.msk [vmem:[%s1143_s4 + $0x10] sm:$0xf] %vm235_vm3, %v625_v49  ;;  %v626_v54 = vpack.c.bf16 %v127_v53, %v127_v53  ;;  %v777_v55 = vpack.c.bf16 %v127_v53, %v124_v48  ;;  %751 = vmatmul.mubr.msk.f32.gmra.mrb[20].mxu0 %vm253_vm2, %v127_v53 }
  0xe8   :  { %243 = vst.msk [vmem:[%s1143_s4 + $0x1c] sm:$0xf] %vm235_vm3, %v628_v51  ;;  %753 = vmatprep.mubr.msk.f32.mxu0 %vm253_vm2, %v691_v46 }
  0xe9   :  { %241 = vst.msk [vmem:[%s1143_s4 + $0x14] sm:$0xf] %vm235_vm3, %v626_v54  ;;  %775 = vmatpush3.bf16.xpose.msk.msra.mxu1 %vm957_vm4, %v773_v41 }
  0xea   :  { %776 = vmatprep.subr.bf16.mxu1 %v836_v33 }
  0xeb   :  { %754 = vmatmul.mubr.msk.f32.gmra.mrb[22].mxu0 %vm253_vm2, %v692_v50  ;;  %v695_v56 = vpop.f32.mrb[8].mxu0 }
  0xec   :  { %v631_v57 = vpack.c.bf16 %v695_v56, %v695_v56  ;;  %v140_v58 = vpop.f32.mrb[9].mxu0 }
  0xed   :  { %v629_v59 = vpack.c.bf16 %v140_v58, %v140_v58  ;;  %v696_v60 = vpop.f32.mrb[10].mxu0  ;;  %756 = vmatprep.mubr.msk.f32.mxu0 %vm253_vm2, %v140_v58 }
  0xee   :  { %246 = vst.msk [vmem:[%s1143_s4 + $0x28] sm:$0xf] %vm235_vm3, %v631_v57  ;;  %v632_v61 = vpack.c.bf16 %v696_v60, %v696_v60  ;;  %v789_v62 = vpack.c.bf16 %v696_v60, %v695_v56  ;;  %v143_v63 = vpop.f32.mrb[11].mxu0 }
  0xef   :  { %244 = vst.msk [vmem:[%s1143_s4 + $0x20] sm:$0xf] %vm235_vm3, %v629_v59  ;;  %v630_v0 = vpack.c.bf16 %v143_v63, %v143_v63  ;;  %v785_v1 = vpack.c.bf16 %v143_v63, %v140_v58  ;;  %757 = vmatmul.mubr.msk.f32.gmra.mrb[24].mxu0 %vm253_vm2, %v143_v63 }
  0xf0   :  { %247 = vst.msk [vmem:[%s1143_s4 + $0x2c] sm:$0xf] %vm235_vm3, %v632_v61  ;;  %759 = vmatprep.mubr.msk.f32.mxu0 %vm253_vm2, %v695_v56 }
  0xf1   :  { %779 = vmatpush3.bf16.xpose.msk.msra.mxu1 %vm957_vm4, %v777_v55  ;;  %245 = vst.msk [vmem:[%s1143_s4 + $0x24] sm:$0xf] %vm235_vm3, %v630_v0 }
  0xf2   :  { %780 = vmatprep.subr.bf16.mxu1 %v836_v33 }
  0xf3   :  { %760 = vmatmul.mubr.msk.f32.gmra.mrb[26].mxu0 %vm253_vm2, %v696_v60  ;;  %v699_v2 = vpop.f32.mrb[12].mxu0 }
  0xf4   :  { %v635_v3 = vpack.c.bf16 %v699_v2, %v699_v2  ;;  %v156_v4 = vpop.f32.mrb[13].mxu0 }
  0xf5   :  { %v633_v5 = vpack.c.bf16 %v156_v4, %v156_v4  ;;  %v700_v6 = vpop.f32.mrb[14].mxu0  ;;  %762 = vmatprep.mubr.msk.f32.mxu0 %vm253_vm2, %v156_v4 }
  0xf6   :  { %250 = vst.msk [vmem:[%s1143_s4 + $0x38] sm:$0xf] %vm235_vm3, %v635_v3  ;;  %v636_v7 = vpack.c.bf16 %v700_v6, %v700_v6  ;;  %v797_v8 = vpack.c.bf16 %v700_v6, %v699_v2  ;;  %v159_v9 = vpop.f32.mrb[15].mxu0 }
  0xf7   :  { %248 = vst.msk [vmem:[%s1143_s4 + $0x30] sm:$0xf] %vm235_vm3, %v633_v5  ;;  %v634_v10 = vpack.c.bf16 %v159_v9, %v159_v9  ;;  %v793_v11 = vpack.c.bf16 %v159_v9, %v156_v4  ;;  %763 = vmatmul.mubr.msk.f32.gmra.mrb[28].mxu0 %vm253_vm2, %v159_v9 }
  0xf8   :  { %251 = vst.msk [vmem:[%s1143_s4 + $0x3c] sm:$0xf] %vm235_vm3, %v636_v7  ;;  %765 = vmatprep.mubr.msk.f32.mxu0 %vm253_vm2, %v699_v2 }
  0xf9   :  { %783 = vmatpush3.bf16.xpose.msk.msra.mxu1 %vm957_vm4, %v781_v52  ;;  %249 = vst.msk [vmem:[%s1143_s4 + $0x34] sm:$0xf] %vm235_vm3, %v634_v10 }
  0xfa   :  { %784 = vmatprep.subr.bf16.mxu1 %v836_v33 }
  0xfb   :  { %766 = vmatmul.mubr.msk.f32.gmra.mrb[30].mxu0 %vm253_vm2, %v700_v6 }
 0x101   :  { %787 = vmatpush3.bf16.xpose.msk.msra.mxu1 %vm957_vm4, %v785_v1 }
 0x102   :  { %788 = vmatprep.subr.bf16.mxu1 %v836_v33 }
 0x109   :  { %791 = vmatpush3.bf16.xpose.msk.msra.mxu1 %vm957_vm4, %v789_v62 }
 0x10a   :  { %792 = vmatprep.subr.bf16.mxu1 %v836_v33 }
 0x111   :  { %795 = vmatpush3.bf16.xpose.msk.msra.mxu1 %vm957_vm4, %v793_v11 }
 0x112   :  { %796 = vmatprep.subr.bf16.mxu1 %v836_v33 }
 0x119   :  { %799 = vmatpush3.bf16.xpose.msk.msra.mxu1 %vm957_vm4, %v797_v8 }
 0x120   :  { %734 = vmatmul.mubr.msk.f32.vlgmr.msra.gmra.mrb[0].mxu1 %vm253_vm2, %v252_v12 }
 0x1b2   :  { %v746_v13 = vpop.f32.mrb[16].mxu0 }
 0x1b3   :  { %527 = vst.msk [vmem:[%s1145_s6 + $0x8] sm:$0xff] %vm525_vm5, %v746_v13  ;;  %v446_v14 = vpop.f32.mrb[17].mxu0 }
 0x1b4   :  { %526 = vst.msk [vmem:[%s1145_s6] sm:$0xff] %vm525_vm5, %v446_v14 }
 0x1b6   :  { %v749_v15 = vpop.f32.mrb[18].mxu0 }
 0x1b7   :  { %529 = vst.msk [vmem:[%s1145_s6 + $0x18] sm:$0xff] %vm525_vm5, %v749_v15  ;;  %v456_v16 = vpop.f32.mrb[19].mxu0 }
 0x1b8   :  { %528 = vst.msk [vmem:[%s1145_s6 + $0x10] sm:$0xff] %vm525_vm5, %v456_v16 }
 0x1ba   :  { %v752_v17 = vpop.f32.mrb[20].mxu0 }
 0x1bb   :  { %531 = vst.msk [vmem:[%s1145_s6 + $0x28] sm:$0xff] %vm525_vm5, %v752_v17  ;;  %v466_v18 = vpop.f32.mrb[21].mxu0 }
 0x1bc   :  { %530 = vst.msk [vmem:[%s1145_s6 + $0x20] sm:$0xff] %vm525_vm5, %v466_v18 }
 0x1be   :  { %v755_v19 = vpop.f32.mrb[22].mxu0 }
 0x1bf   :  { %533 = vst.msk [vmem:[%s1145_s6 + $0x38] sm:$0xff] %vm525_vm5, %v755_v19  ;;  %v476_v20 = vpop.f32.mrb[23].mxu0 }
 0x1c0   :  { %532 = vst.msk [vmem:[%s1145_s6 + $0x30] sm:$0xff] %vm525_vm5, %v476_v20 }
 0x1c2   :  { %v758_v21 = vpop.f32.mrb[24].mxu0 }
 0x1c3   :  { %535 = vst.msk [vmem:[%s1145_s6 + $0x48] sm:$0xff] %vm525_vm5, %v758_v21  ;;  %v486_v22 = vpop.f32.mrb[25].mxu0 }
 0x1c4   :  { %534 = vst.msk [vmem:[%s1145_s6 + $0x40] sm:$0xff] %vm525_vm5, %v486_v22 }
 0x1c6   :  { %v761_v23 = vpop.f32.mrb[26].mxu0 }
 0x1c7   :  { %537 = vst.msk [vmem:[%s1145_s6 + $0x58] sm:$0xff] %vm525_vm5, %v761_v23  ;;  %v496_v24 = vpop.f32.mrb[27].mxu0 }
 0x1c8   :  { %536 = vst.msk [vmem:[%s1145_s6 + $0x50] sm:$0xff] %vm525_vm5, %v496_v24 }
 0x1ca   :  { %v764_v25 = vpop.f32.mrb[28].mxu0 }
 0x1cb   :  { %539 = vst.msk [vmem:[%s1145_s6 + $0x68] sm:$0xff] %vm525_vm5, %v764_v25  ;;  %v506_v26 = vpop.f32.mrb[29].mxu0 }
 0x1cc   :  { %538 = vst.msk [vmem:[%s1145_s6 + $0x60] sm:$0xff] %vm525_vm5, %v506_v26 }
 0x1ce   :  { %v767_v27 = vpop.f32.mrb[30].mxu0 }
 0x1cf   :  { %541 = vst.msk [vmem:[%s1145_s6 + $0x78] sm:$0xff] %vm525_vm5, %v767_v27  ;;  %v516_v28 = vpop.f32.mrb[31].mxu0 }
 0x1d0   :  { %540 = vst.msk [vmem:[%s1145_s6 + $0x70] sm:$0xff] %vm525_vm5, %v516_v28 }
 0x1f3   :  { %v371_v29 = vpop.f32.mrb[0].mxu1 }
 0x1f4   :  { %375 = vst [vmem:[#allocation2] sm:$0xf] %v371_v29  ;;  %v735_v30 = vpop.f32.mrb[1].mxu1 }
 0x1f5   :  { %823 = shalt.err (!%p820_p4)
}
 0x1f6   :  { %s824_s26 = scalar_lea.hbm %s1144_s5, 64 }
 0x1f7   :  { %p825_p5 = scmp.ne.s32.totalorder %s1144_s5, %s824_s26  ;;  %p828_p6 = scmp.lt.u32.totalorder %s824_s26, %s1144_s5 }
 0x1f9   :  { %p830_p7 = pnand %p828_p6, %p825_p5 }
 0x1fb   :  { %833 = shalt.err (!%p830_p7)
}
 0x1fc   :  { %553 = dma.vmem_to_hbm [thread:$0]  %s551_s23, 64, %s1144_s5, [#allocation3]  }
 0x1fd   :  { %834 = dma.done.wait [#allocation3], 64  }
 0x1fe   :  { %835 = vsyncadd [#allocation3], 4294967232 }
 0x1ff   :  { %563 = vsyncpa [#allocation3], 1 }

</bundles_post_ra>
